<compile_context>
chip_gen: v7x
topology: tpu7x:2x2x1
jax: 0.10.0
libtpu: 0.0.40
codegen_flags: <defaults>
</compile_context>

<pallas_src>
import math

import jax
import jax.numpy as jnp
from jax.experimental import pallas as pl
from jax.experimental.pallas import tpu as pltpu

_INV_SQRT2 = 1.0 / math.sqrt(2.0)
_MIB = 1024 * 1024

# Lane-dense widths (multiples of 128) tried widest-first. 1024 already gives
# unmasked vst; wider widths just mean longer contiguous store/DMA streams.
_LANE_CANDIDATES = (8192, 4096, 2048, 1024, 512, 256, 128)


def _hgelu_kernel(x_ref, o_ref):
    # Keep everything in f32 and select on p < 0.5 so the result matches the
    # reference 0.5*(1+erf(x/sqrt(2))) formulation exactly (tanh-form GELU /
    # bf16 compute would change numerics, so they are intentionally not used).
    x = x_ref[...].astype(jnp.float32)
    p = 0.5 * (1.0 + jax.lax.erf(x * _INV_SQRT2))
    w = jnp.where(p < 0.5, p, 2.0 - p)
    o_ref[...] = (w * x).astype(o_ref.dtype)


def _device_kind() -> str:
    try:
        return jax.devices()[0].device_kind.lower()
    except Exception:
        return ""


def _gen_params():
    """Generation-aware (target_block_bytes, vmem_limit_bytes, is_v7x)."""
    kind = _device_kind()
    if "v7" in kind:
        # 64 MiB VMEM per TC: 4 MiB blocks, in+out double-buffered ~= 16 MiB.
        return 4 * _MIB, 32 * _MIB, True
    if "v5" in kind or "v6" in kind:
        # 128 MiB physical VMEM, single TC: bigger 8 MiB blocks (~32 MiB in flight).
        return 8 * _MIB, 64 * _MIB, False
    # Unknown part: conservative settings that are safe everywhere.
    return 4 * _MIB, 32 * _MIB, False


def _round_down(v: int, m: int) -> int:
    return (v // m) * m


def _choose_tm(rows: int, lane: int, itemsize: int,
               target_block_bytes: int, is_v7x: bool) -> int:
    sublane = max(8, 32 // itemsize)  # f32 -> 8, bf16 -> 16, int8/fp8 -> 32
    if rows <= sublane:
        return rows  # full-extent row block (tiny tensor)

    row_bytes = lane * itemsize
    budget_rows = max(sublane, _round_down(target_block_bytes // row_bytes, sublane))
    rows_rounded = _round_down(rows, sublane)

    # Minimum useful step count: 2 on single-TC parts (enough to double-buffer a
    # mem-bound elementwise op), 4 on v7x (so both TensorCores get work) -- but
    # never shrink the block below ~2 MiB just to hit the step count.
    steps_target = 4 if is_v7x else 2
    min_rows = max(sublane, _round_down((2 * _MIB) // row_bytes, sublane))
    depth_rows = max(min_rows, _round_down(rows // steps_target, sublane))

    tm = min(budget_rows, depth_rows, rows_rounded)

    if is_v7x:
        steps = pl.cdiv(rows, tm)
        if steps > 1 and steps % 2 == 1:
            # Nudge to an even step count so the two TCs get balanced work.
            tm2 = -(-rows // (steps + 1))                       # cdiv
            tm2 = max(sublane, -(-tm2 // sublane) * sublane)    # round up to sublane
            if tm2 <= rows_rounded and pl.cdiv(rows, tm2) % 2 == 0:
                tm = tm2
    return tm


def _run_2d(x2d: jax.Array) -> jax.Array:
    rows, lane = x2d.shape
    itemsize = jnp.dtype(x2d.dtype).itemsize
    target_block_bytes, vmem_limit, is_v7x = _gen_params()

    tm = _choose_tm(rows, lane, itemsize, target_block_bytes, is_v7x)
    grid = (pl.cdiv(rows, tm),)  # ragged row tail handled by Pallas edge-block masking

    n = rows * lane
    cost = pl.CostEstimate(
        flops=6 * n, transcendentals=n, bytes_accessed=2 * n * itemsize)

    return pl.pallas_call(
        _hgelu_kernel,
        out_shape=jax.ShapeDtypeStruct((rows, lane), x2d.dtype),
        grid=grid,
        in_specs=[pl.BlockSpec((tm, lane), lambda i: (i, 0))],
        out_specs=pl.BlockSpec((tm, lane), lambda i: (i, 0)),
        compiler_params=pltpu.CompilerParams(
            dimension_semantics=("parallel",),
            vmem_limit_bytes=vmem_limit,
        ),
        cost_estimate=cost,
    )(x2d)


def _pick_lane(n: int, sublane: int):
    # Widest lane width dividing n that still leaves rows >= sublane ...
    for c in _LANE_CANDIDATES:
        if n % c == 0 and n // c >= sublane:
            return c
    # ... otherwise the widest one that divides n at all (tiny tensors).
    for c in _LANE_CANDIDATES:
        if n % c == 0:
            return c
    return None


def _hgelu_xla(x):
    xf = x.astype(jnp.float32)
    p = 0.5 * (1.0 + jax.lax.erf(xf * _INV_SQRT2))
    w = jnp.where(p < 0.5, p, 2.0 - p)
    return (w * xf).astype(x.dtype)


def hgelu_pallas(x: jax.Array) -> jax.Array:
    orig_shape = x.shape
    n = x.size
    if n == 0:
        return x
    itemsize = jnp.dtype(x.dtype).itemsize
    sublane = max(8, 32 // itemsize)

    lane = _pick_lane(n, sublane)
    if lane is not None:
        out2d = _run_2d(x.reshape(n // lane, lane))
        return out2d.reshape(orig_shape)

    # Ragged fallback (size not a multiple of 128): run the kernel on the
    # 128-aligned bulk; compute the <128-element tail with plain XLA. No
    # whole-tensor pad / slice passes.
    flat = x.reshape(-1)
    n_bulk = _round_down(n, 128)
    if n_bulk == 0:
        # Whole tensor smaller than one 128-lane row: single full-extent block.
        return _run_2d(flat.reshape(1, n)).reshape(orig_shape)
    lane_b = _pick_lane(n_bulk, sublane) or 128
    bulk_out = _run_2d(flat[:n_bulk].reshape(n_bulk // lane_b, lane_b)).reshape(-1)
    tail_out = _hgelu_xla(flat[n_bulk:])
    return jnp.concatenate([bulk_out, tail_out]).reshape(orig_shape)


def _hgelu_ref(x):
    return _hgelu_xla(x)


if __name__ == "__main__":
    key = jax.random.PRNGKey(0)

    # Main NCHW case (lane-dense fast path).
    x = jax.random.normal(key, (2, 4, 16, 16), dtype=jnp.float32) * 2.0
    out = hgelu_pallas(x)
    jax.block_until_ready(out)
    ref = _hgelu_ref(x)
    assert out.shape == x.shape and out.dtype == x.dtype
    assert jnp.allclose(out, ref, atol=1e-5, rtol=1e-5), "mismatch vs reference (main)"

    # Larger lane-dense case.
    k1, k2 = jax.random.split(key)
    x_big = jax.random.normal(k1, (2, 4, 64, 128), dtype=jnp.float32) * 2.0
    out_big = hgelu_pallas(x_big)
    jax.block_until_ready(out_big)
    assert jnp.allclose(out_big, _hgelu_ref(x_big), atol=1e-5, rtol=1e-5), \
        "mismatch vs reference (tiled)"

    # Ragged-size fallback path (size not divisible by 128): aligned bulk + XLA tail.
    x_odd = jax.random.normal(k2, (3, 5, 7, 3), dtype=jnp.float32) * 2.0
    out_odd = hgelu_pallas(x_odd)
    jax.block_until_ready(out_odd)
    assert jnp.allclose(out_odd, _hgelu_ref(x_odd), atol=1e-5, rtol=1e-5), \
        "mismatch vs reference (ragged)"

    print("KERNEL_OK")
</pallas_src>

<mosaic_0001>
module attributes {stable_mosaic.version = 11 : i64} {
  func.func @_hgelu_kernel(%arg0: i32, %arg1: memref<8x256xf32, #tpu.memory_space<vmem>>, %arg2: memref<8x256xf32, #tpu.memory_space<vmem>>) attributes {dimension_semantics = [#tpu.dimension_semantics<parallel>], iteration_bounds = array<i64: 1>, scalar_prefetch = 0 : i64, scratch_operands = 0 : i64, tpu.core_type = #tpu.core_type<tc>, window_params = [{transform_indices = @transform_0, window_bounds = array<i64: 8, 256>}, {transform_indices = @transform_1, window_bounds = array<i64: 8, 256>}]} {
    %c0 = arith.constant 0 : index
    %c0_0 = arith.constant 0 : index
    %0 = vector.load %arg1[%c0, %c0_0] : memref<8x256xf32, #tpu.memory_space<vmem>>, vector<8x256xf32>
    %cst = arith.constant 0.707106769 : f32
    %1 = vector.broadcast %cst : f32 to vector<8x256xf32>
    %2 = arith.mulf %0, %1 : vector<8x256xf32>
    %3 = math.erf %2 : vector<8x256xf32>
    %cst_1 = arith.constant 1.000000e+00 : f32
    %4 = vector.broadcast %cst_1 : f32 to vector<8x256xf32>
    %5 = arith.addf %4, %3 : vector<8x256xf32>
    %cst_2 = arith.constant 5.000000e-01 : f32
    %6 = vector.broadcast %cst_2 : f32 to vector<8x256xf32>
    %7 = arith.mulf %6, %5 : vector<8x256xf32>
    %cst_3 = arith.constant 5.000000e-01 : f32
    %8 = vector.broadcast %cst_3 : f32 to vector<8x256xf32>
    %9 = arith.cmpf olt, %7, %8 : vector<8x256xf32>
    %cst_4 = arith.constant 2.000000e+00 : f32
    %10 = vector.broadcast %cst_4 : f32 to vector<8x256xf32>
    %11 = arith.subf %10, %7 : vector<8x256xf32>
    %12 = arith.select %9, %7, %11 : vector<8x256xi1>, vector<8x256xf32>
    %13 = arith.mulf %12, %0 : vector<8x256xf32>
    %c0_5 = arith.constant 0 : index
    %c0_6 = arith.constant 0 : index
    %14 = vector.load %arg2[%c0_5, %c0_6] : memref<8x256xf32, #tpu.memory_space<vmem>>, vector<8x256xf32>
    tpu.vector_store %arg2[%c0_5, %c0_6], %13 {strides = array<i32>} : memref<8x256xf32, #tpu.memory_space<vmem>>, vector<8x256xf32>,
    return
  }
  func.func @transform_0(%arg0: i32) -> (i32, i32) {
    %c0_i32 = arith.constant 0 : i32
    %c0_i32_0 = arith.constant 0 : i32
    return %arg0, %c0_i32 : i32, i32
  }
  func.func @transform_1(%arg0: i32) -> (i32, i32) {
    %c0_i32 = arith.constant 0 : i32
    %c0_i32_0 = arith.constant 0 : i32
    return %arg0, %c0_i32 : i32, i32
  }
}

</mosaic_0001>

<bundles_post_ra>
// kernel: tpu_custom_call.1
= control target key start
LH: loop header
LB: loop body
LE: loop exit
PB: predicated region body
PF: predicated region fallthrough
CT: control target
= control target key end

     0   :  { %6 = vsyncpa [#allocation3], 0  ;;  %s146_s0 = inlined_call_operand.hbm [shape: f32[8,256], index: 0, kind: input, shape index: {}]   ;;  %s147_s1 = inlined_call_operand.hbm [shape: f32[8,256], index: 1, kind: output, shape index: {}]  }
   0x1   :  { %7 = vsyncpa [#allocation4], 0  ;;  %s110_s6 = smov [#allocation2]   ;;  %s62_s10 = scalar_lea.hbm %s146_s0, 256 }
   0x2   :  { %s14_s7 = sshll.u32 %s110_s6, 4  ;;  %p63_p0 = scmp.ne.s32.totalorder %s146_s0, %s62_s10  ;;  %s15_s7 = int_to_ptr.vmem [resolvable:$true] %s14_s7 }
   0x3   :  { %p66_p1 = scmp.lt.u32.totalorder %s62_s10, %s146_s0 }
   0x5   :  { %p68_p2 = pnand %p66_p1, %p63_p0 }
   0x7   :  { %71 = shalt.err (!%p68_p2)
}
   0x8   :  { %s72_s15 = scalar_lea.vmem %s15_s7, 256  ;;  %p77_p4 = scmp.lt.s32.totalorder %s15_s7, %s15_s7 }
   0x9   :  { %p73_p3 = scmp.ne.s32.totalorder %s15_s7, %s72_s15  ;;  %p78_p5 = scmp.lt.s32.totalorder %s72_s15, %s72_s15 }
   0xb   :  { %p79_p6 = por %p78_p5, %p77_p4 }
   0xd   :  { %p80_p7 = pnand %p79_p6, %p73_p3 }
   0xf   :  { %83 = shalt.err (!%p80_p7)
}
  0x10   :  { %17 = dma.hbm_to_vmem [thread:$0]  %s146_s0, 256, %s15_s7, [#allocation3]  }
  0x11   :  { %106 = dma.done.wait [#allocation3], 256  }
  0x12   :  { %107 = vsyncadd [#allocation3], 4294967040  ;;  %v21_v0 = vld [vmem:[#allocation2] sm:$0xff]  ;;  %v22_v1 = vld [vmem:[#allocation2 + $0x8] sm:$0xff]  ;;  %s111_s18 = smov [#allocation5]  }
  0x13   :  { %v23_v2 = vmul.f32 0.70710677, %v21_v0  ;;  %v24_v3 = vmul.f32 0.70710677, %v22_v1  ;;  %s47_s0 = sshll.u32 %s111_s18, 4  ;;  %s48_s0 = int_to_ptr.vmem [resolvable:$true] %s47_s0 }
  0x14   :  { %s84_s19 = scalar_lea.vmem %s48_s0, 256  ;;  %p89_p9 = scmp.lt.s32.totalorder %s48_s0, %s48_s0 }
  0x15   :  { %58 = verf.f32 %v23_v2  ;;  %p85_p8 = scmp.ne.s32.totalorder %s48_s0, %s84_s19  ;;  %p90_p10 = scmp.lt.s32.totalorder %s84_s19, %s84_s19 }
  0x16   :  { %60 = verf.f32 %v24_v3 }
  0x17   :  { %p91_p11 = por %p90_p10, %p89_p9 }
  0x19   :  { %p92_p12 = pnand %p91_p11, %p85_p8 }
  0x1f   :  { %v59_v4 = vpop.eup %58 }
  0x20   :  { %v61_v5 = vpop.eup %60  ;;  %v27_v6 = vadd.f32 1.0, %v59_v4 }
  0x21   :  { %v28_v7 = vadd.f32 1.0, %v61_v5 }
  0x22   :  { %v29_v8 = vmul.f32 0.5, %v27_v6 }
  0x23   :  { %v30_v9 = vmul.f32 0.5, %v28_v7 }
  0x24   :  { %vm31_vm0 = vcmp.lt.f32.partialorder %v29_v8, 0.5  ;;  %v33_v10 = vsub.f32 2.0, %v29_v8 }
  0x25   :  { %vm32_vm1 = vcmp.lt.f32.partialorder %v30_v9, 0.5  ;;  %v34_v11 = vsub.f32 2.0, %v30_v9 }
  0x26   :  { %v35_v12 = vsel %vm31_vm0, %v29_v8, %v33_v10 }
  0x27   :  { %v37_v13 = vmul.f32 %v35_v12, %v21_v0  ;;  %v36_v14 = vsel %vm32_vm1, %v30_v9, %v34_v11 }
  0x28   :  { %v38_v15 = vmul.f32 %v36_v14, %v22_v1 }
  0x29   :  { %39 = vst [vmem:[#allocation5] sm:$0xff] %v37_v13 }
  0x2a   :  { %40 = vst [vmem:[#allocation5 + $0x8] sm:$0xff] %v38_v15 }
  0x2b   :  { %95 = shalt.err (!%p92_p12)
}
  0x2c   :  { %s96_s22 = scalar_lea.hbm %s147_s1, 256 }
  0x2d   :  { %p97_p13 = scmp.ne.s32.totalorder %s147_s1, %s96_s22  ;;  %p100_p0 = scmp.lt.u32.totalorder %s96_s22, %s147_s1 }
  0x2f   :  { %p102_p1 = pnand %p100_p0, %p97_p13 }
  0x31   :  { %105 = shalt.err (!%p102_p1)
}
  0x32   :  { %50 = dma.vmem_to_hbm [thread:$0]  %s48_s0, 256, %s147_s1, [#allocation4]  }
  0x33   :  { %108 = dma.done.wait [#allocation4], 256  }
  0x34   :  { %109 = vsyncadd [#allocation4], 4294967040 }
  0x35   :  { %54 = vsyncpa [#allocation3], 1 }
  0x36   :  { %55 = vsyncpa [#allocation4], 1 }

</bundles_post_ra>
